<compile_context>
chip_gen: v6e
topology: v6e:2x2x1
jax: 0.10.0
libtpu: 0.0.40
codegen_flags: <defaults>
</compile_context>

<pallas_src>
import functools

import jax
import jax.numpy as jnp
from jax import lax
from jax.experimental import pallas as pl
from jax.experimental.pallas import tpu as pltpu

_LANE = 128
_EPS = 1e-5
_VMEM_LIMIT = 32 * 1024 * 1024           # scoped VMEM cap (safe on v5e/v6e/v7x)
_VMEM_BUDGET = 16 * 1024 * 1024          # target live bytes per grid step


def _round_up(x, m):
    return (x + m - 1) // m * m


# ---------------------------------------------------------------------------
# Pass 1: convolution (im2col-in-K, bf16 MXU inputs, f32 accumulate).
# When normalize=True it also emits per-tile per-channel (sum, sum_sq);
# when normalize=False it applies bias (+ ReLU) and writes the final output.
# ---------------------------------------------------------------------------
def _conv_kernel(x_ref, w_ref, *rest,
                 stride, kh, kw, tile_h, w_out, h_out,
                 normalize, relu, needs_mask):
    if normalize:
        y_ref, mom_ref = rest
    else:
        b_ref, y_ref = rest

    c_in = x_ref.shape[-1]
    c_out_p = w_ref.shape[1]
    m = tile_h * w_out

    x = x_ref[0, 0]                                   # (tile_h_in, w_pad, c_in)

    # Build the im2col block once per row tile: K = kh*kw*c_in.
    cols = []
    for dy in range(kh):
        for dx in range(kw):
            patch = lax.slice(
                x,
                (dy, dx, 0),
                (dy + (tile_h - 1) * stride + 1,
                 dx + (w_out - 1) * stride + 1,
                 c_in),
                (stride, stride, 1))                  # (tile_h, w_out, c_in)
            cols.append(patch.reshape(m, c_in))
    im2col = jnp.concatenate(cols, axis=1)            # (m, kh*kw*c_in) bf16

    acc = jnp.dot(im2col, w_ref[...],
                  preferred_element_type=jnp.float32)  # (m, c_out_p) f32
    acc = acc.reshape(tile_h, w_out, c_out_p)

    if normalize:
        # Conv bias is cancelled exactly by the mean subtraction -> skipped.
        a = acc
        if needs_mask:
            t = pl.program_id(1)
            row = lax.broadcasted_iota(jnp.int32, (tile_h, w_out, 1), 0)
            valid = (t * tile_h + row) < h_out
            a = acc * valid.astype(jnp.float32)
        mom_ref[0, 0, 0, :] = jnp.sum(a, axis=(0, 1))
        mom_ref[0, 0, 1, :] = jnp.sum(acc * a, axis=(0, 1))
    else:
        acc = acc + b_ref[0]
        if relu:
            acc = jnp.maximum(acc, 0.0)

    y_ref[...] = acc.reshape(1, tile_h, w_out, c_out_p)


# ---------------------------------------------------------------------------
# Pass 2 (normalize=True only): apply fused per-(sample, channel) scale/shift
# (gamma * rsqrt(var+eps), beta - mean*scale) and optional ReLU.
# ---------------------------------------------------------------------------
def _affine_relu_kernel(y_ref, sc_ref, sh_ref, o_ref, *, relu):
    out = y_ref[...] * sc_ref[0, 0] + sh_ref[0, 0]
    if relu:
        out = jnp.maximum(out, 0.0)
    o_ref[...] = out


def _pick_tile_rows(h_out, w_out, w_pad, c_in, c_out_p, kh, kw, stride,
                    budget_bytes=_VMEM_BUDGET):
    """Largest output-row tile whose live VMEM estimate fits the budget."""
    def live_bytes(th):
        m = th * w_out
        tile_h_in = (th - 1) * stride + kh
        in_b = tile_h_in * w_pad * c_in * 2            # bf16, double buffered
        out_b = m * c_out_p * 4                        # f32, double buffered
        scratch = m * (kh * kw * c_in * 2 + c_out_p * 4)  # im2col + f32 acc
        return 2 * in_b + 2 * out_b + scratch

    th = min(h_out, 64)
    if h_out >= 2:
        th = min(th, (h_out + 1) // 2)   # >=2 row tiles -> use both v7x cores
    while th > 1 and live_bytes(th) > budget_bytes:
        th = (th + 1) // 2
    return max(th, 1)


def conv_block(x_nchw, weight_oihw, bias, gamma, beta, *,
               kernel_size, stride=1, upsample=False, normalize=True,
               relu=True, eps=_EPS):
    """ConvBlock.forward.  x_nchw: (N, C_in, H, W) float32.  Returns NCHW f32."""
    x = x_nchw.astype(jnp.bfloat16)      # bf16 activations (halved HBM traffic)
    if upsample:
        # TODO(synk): fuse nearest-2x upsample into the conv index_map.
        x = jnp.repeat(jnp.repeat(x, 2, axis=2), 2, axis=3)

    pad = kernel_size // 2
    kh = kw = kernel_size
    x = jnp.transpose(x, (0, 2, 3, 1))                                  # NHWC
    x = jnp.pad(x, ((0, 0), (pad, pad), (pad, pad), (0, 0)), mode="reflect")
    n, h_pad, w_pad, c_in = x.shape
    h_out = (h_pad - kh) // stride + 1
    w_out = (w_pad - kw) // stride + 1
    c_out = weight_oihw.shape[0]
    c_out_p = _round_up(c_out, _LANE)
    k_tot = kh * kw * c_in

    # Weights: OIHW -> HWIO -> (kh*kw*C_in, C_out), pad C_out to a lane multiple.
    w_flat = jnp.transpose(weight_oihw, (2, 3, 1, 0)).reshape(k_tot, c_out)
    w_flat = jnp.pad(w_flat, ((0, 0), (0, c_out_p - c_out))).astype(jnp.bfloat16)
    bias_p = jnp.pad(bias.astype(jnp.float32), (0, c_out_p - c_out))
    gamma_p = jnp.pad(gamma.astype(jnp.float32), (0, c_out_p - c_out))
    beta_p = jnp.pad(beta.astype(jnp.float32), (0, c_out_p - c_out))

    # ----- spatial row tiling (halo rows duplicated once in the wrapper) -----
    tile_h = _pick_tile_rows(h_out, w_out, w_pad, c_in, c_out_p, kh, kw, stride)
    num_t = -(-h_out // tile_h)
    tile_h_in = (tile_h - 1) * stride + kh
    rows_needed = (num_t * tile_h - 1) * stride + kh
    if rows_needed > h_pad:
        x = jnp.pad(x, ((0, 0), (0, rows_needed - h_pad), (0, 0), (0, 0)))
    x_windows = jnp.stack(
        [lax.slice_in_dim(x, t * tile_h * stride,
                          t * tile_h * stride + tile_h_in, axis=1)
         for t in range(num_t)], axis=1)   # (N, T, tile_h_in, W_pad, C_in) bf16

    needs_mask = (num_t * tile_h) != h_out
    m = tile_h * w_out

    kern = functools.partial(
        _conv_kernel, stride=stride, kh=kh, kw=kw, tile_h=tile_h,
        w_out=w_out, h_out=h_out, normalize=normalize, relu=relu,
        needs_mask=needs_mask)

    x_spec = pl.BlockSpec((1, 1, tile_h_in, w_pad, c_in),
                          lambda i, t: (i, t, 0, 0, 0))
    w_spec = pl.BlockSpec((k_tot, c_out_p), lambda i, t: (0, 0))
    y_spec = pl.BlockSpec((1, tile_h, w_out, c_out_p),
                          lambda i, t: (i, t, 0, 0))
    y_struct = jax.ShapeDtypeStruct((n, num_t * tile_h, w_out, c_out_p),
                                    jnp.float32)

    in_arrays = [x_windows, w_flat]
    in_specs = [x_spec, w_spec]
    if normalize:
        out_shape = (y_struct,
                     jax.ShapeDtypeStruct((n, num_t, 2, c_out_p), jnp.float32))
        out_specs = (y_spec,
                     pl.BlockSpec((1, 1, 2, c_out_p), lambda i, t: (i, t, 0, 0)))
    else:
        in_arrays.append(bias_p.reshape(1, c_out_p))
        in_specs.append(pl.BlockSpec((1, c_out_p), lambda i, t: (0, 0)))
        out_shape = y_struct
        out_specs = y_spec

    flops = 2 * n * num_t * m * k_tot * c_out_p
    bytes_accessed = (x_windows.size * 2 + w_flat.size * 2
                      + n * num_t * m * c_out_p * 4)
    conv_out = pl.pallas_call(
        kern,
        grid=(n, num_t),
        in_specs=in_specs,
        out_specs=out_specs,
        out_shape=out_shape,
        compiler_params=pltpu.CompilerParams(
            dimension_semantics=("parallel", "parallel"),
            vmem_limit_bytes=_VMEM_LIMIT),
        cost_estimate=pl.CostEstimate(flops=flops, transcendentals=0,
                                      bytes_accessed=bytes_accessed),
    )(*in_arrays)

    if normalize:
        y_full, moments = conv_out
        cnt = float(h_out * w_out)
        s = jnp.sum(moments[:, :, 0, :], axis=1)            # (N, C_out_p)
        sq = jnp.sum(moments[:, :, 1, :], axis=1)
        mean = s / cnt
        var = jnp.maximum(sq / cnt - mean * mean, 0.0)      # biased variance
        inv = lax.rsqrt(var + eps)
        scale = (gamma_p[None, :] * inv).reshape(n, 1, c_out_p)
        shift = (beta_p[None, :] - mean * gamma_p[None, :] * inv
                 ).reshape(n, 1, c_out_p)

        y_full = pl.pallas_call(
            functools.partial(_affine_relu_kernel, relu=relu),
            grid=(n, num_t),
            in_specs=[y_spec,
                      pl.BlockSpec((1, 1, c_out_p), lambda i, t: (i, 0, 0)),
                      pl.BlockSpec((1, 1, c_out_p), lambda i, t: (i, 0, 0))],
            out_specs=y_spec,
            out_shape=y_struct,
            compiler_params=pltpu.CompilerParams(
                dimension_semantics=("parallel", "parallel"),
                vmem_limit_bytes=_VMEM_LIMIT),
            cost_estimate=pl.CostEstimate(
                flops=3 * n * num_t * m * c_out_p, transcendentals=0,
                bytes_accessed=2 * n * num_t * m * c_out_p * 4),
        )(y_full, scale, shift)
    else:
        y_full = conv_out

    y = y_full[:, :h_out, :, :c_out]
    return jnp.transpose(y, (0, 3, 1, 2)).astype(jnp.float32)


# ---------------------------------------------------------------------------
# Pure-JAX reference (PyTorch-faithful); matmul_dtype=bfloat16 mirrors the
# kernel's bf16-input / f32-accumulate matmul for a tight comparison.
# ---------------------------------------------------------------------------
def conv_block_reference(x_nchw, weight_oihw, bias, gamma, beta, *,
                         kernel_size, stride=1, upsample=False,
                         normalize=True, relu=True, eps=_EPS,
                         matmul_dtype=jnp.float32):
    x = x_nchw.astype(matmul_dtype)
    if upsample:
        x = jnp.repeat(jnp.repeat(x, 2, axis=2), 2, axis=3)
    pad = kernel_size // 2
    x = jnp.transpose(x, (0, 2, 3, 1))
    x = jnp.pad(x, ((0, 0), (pad, pad), (pad, pad), (0, 0)), mode="reflect")
    w_hwio = jnp.transpose(weight_oihw, (2, 3, 1, 0)).astype(matmul_dtype)
    y = lax.conv_general_dilated(
        x, w_hwio, window_strides=(stride, stride), padding="VALID",
        dimension_numbers=("NHWC", "HWIO", "NHWC"),
        preferred_element_type=jnp.float32)
    y = y + bias.reshape(1, 1, 1, -1).astype(jnp.float32)
    if normalize:
        mean = jnp.mean(y, axis=(1, 2), keepdims=True)
        var = jnp.mean((y - mean) ** 2, axis=(1, 2), keepdims=True)
        y = (y - mean) * lax.rsqrt(var + eps)
        y = y * gamma.reshape(1, 1, 1, -1) + beta.reshape(1, 1, 1, -1)
    if relu:
        y = jnp.maximum(y, 0.0)
    return jnp.transpose(y, (0, 3, 1, 2))


def _check(name, x, weight, bias, gamma, beta, **kw):
    out = conv_block(x, weight, bias, gamma, beta, **kw)
    out = jax.block_until_ready(out)
    ref_b = conv_block_reference(x, weight, bias, gamma, beta,
                                 matmul_dtype=jnp.bfloat16, **kw)
    ref_f = conv_block_reference(x, weight, bias, gamma, beta,
                                 matmul_dtype=jnp.float32, **kw)
    assert out.shape == ref_f.shape, (name, out.shape, ref_f.shape)
    err_b = float(jnp.max(jnp.abs(out - ref_b)))
    err_f = float(jnp.max(jnp.abs(out - ref_f)))
    assert err_b < 2e-3, f"{name}: bf16-matched max abs err {err_b}"
    assert err_f < 5e-2, f"{name}: f32-reference max abs err {err_f}"
    return out


if __name__ == "__main__":
    key = jax.random.PRNGKey(0)
    kx, kw_, kb, kg, kbt = jax.random.split(key, 5)

    # ConvBlock(in=4, out=8, kernel_size=3, stride=1, normalize=True, relu=True)
    N, C_IN, H, W, C_OUT, K = 2, 4, 16, 16, 8, 3
    x = jax.random.normal(kx, (N, C_IN, H, W), dtype=jnp.float32)
    weight = 0.1 * jax.random.normal(kw_, (C_OUT, C_IN, K, K), dtype=jnp.float32)
    bias = 0.1 * jax.random.normal(kb, (C_OUT,), dtype=jnp.float32)
    gamma = 1.0 + 0.1 * jax.random.normal(kg, (C_OUT,), dtype=jnp.float32)
    beta = 0.1 * jax.random.normal(kbt, (C_OUT,), dtype=jnp.float32)

    _check("base", x, weight, bias, gamma, beta,
           kernel_size=K, stride=1, upsample=False, normalize=True, relu=True)

    # upsample branch (N=1 inference style; row tiles shard the grid)
    _check("upsample", x[:1, :, :8, :8], weight, bias, gamma, beta,
           kernel_size=K, stride=1, upsample=True, normalize=True, relu=True)

    # no-normalization branch (bias + ReLU fused into pass 1)
    _check("no_norm", x, weight, bias, gamma, beta,
           kernel_size=K, stride=1, upsample=False, normalize=False, relu=True)

    # odd spatial size exercises the masked InstanceNorm accumulation path
    _check("mask", x[:, :, :9, :9], weight, bias, gamma, beta,
           kernel_size=K, stride=1, upsample=False, normalize=True, relu=True)

    print("KERNEL_OK")
</pallas_src>

<mosaic_0001>
module attributes {stable_mosaic.version = 11 : i64} {
  func.func @_conv_kernel(%arg0: i32, %arg1: i32, %arg2: memref<1x1x10x18x4xbf16, #tpu.memory_space<vmem>>, %arg3: memref<36x128xbf16, #tpu.memory_space<vmem>>, %arg4: memref<1x8x16x128xf32, #tpu.memory_space<vmem>>, %arg5: memref<1x1x2x128xf32, #tpu.memory_space<vmem>>) attributes {dimension_semantics = [#tpu.dimension_semantics<parallel>, #tpu.dimension_semantics<parallel>], iteration_bounds = array<i64: 2, 2>, scalar_prefetch = 0 : i64, scratch_operands = 0 : i64, tpu.core_type = #tpu.core_type<tc>, window_params = [{transform_indices = @transform_0, window_bounds = array<i64: 1, 1, 10, 18, 4>}, {pipeline_mode = #tpu.pipeline_mode<synchronous>, transform_indices = @transform_1, window_bounds = array<i64: 36, 128>}, {transform_indices = @transform_2, window_bounds = array<i64: 1, 8, 16, 128>}, {transform_indices = @transform_3, window_bounds = array<i64: 1, 1, 2, 128>}]} {
    %c0 = arith.constant 0 : index
    %c0_0 = arith.constant 0 : index
    %c0_1 = arith.constant 0 : index
    %c0_2 = arith.constant 0 : index
    %c0_3 = arith.constant 0 : index
    %0 = vector.load %arg2[%c0, %c0_0, %c0_1, %c0_2, %c0_3] : memref<1x1x10x18x4xbf16, #tpu.memory_space<vmem>>, vector<1x1x10x18x4xbf16>
    %1 = vector.shape_cast %0 : vector<1x1x10x18x4xbf16> to vector<10x18x4xbf16>
    %2 = vector.extract_strided_slice %1 {offsets = [0, 0, 0], sizes = [8, 16, 4], strides = [1, 1, 1]} : vector<10x18x4xbf16> to vector<8x16x4xbf16>
    %3 = vector.shape_cast %2 : vector<8x16x4xbf16> to vector<128x4xbf16>
    %4 = vector.extract_strided_slice %1 {offsets = [0, 1, 0], sizes = [8, 16, 4], strides = [1, 1, 1]} : vector<10x18x4xbf16> to vector<8x16x4xbf16>
    %5 = vector.shape_cast %4 : vector<8x16x4xbf16> to vector<128x4xbf16>
    %6 = vector.extract_strided_slice %1 {offsets = [0, 2, 0], sizes = [8, 16, 4], strides = [1, 1, 1]} : vector<10x18x4xbf16> to vector<8x16x4xbf16>
    %7 = vector.shape_cast %6 : vector<8x16x4xbf16> to vector<128x4xbf16>
    %8 = vector.extract_strided_slice %1 {offsets = [1, 0, 0], sizes = [8, 16, 4], strides = [1, 1, 1]} : vector<10x18x4xbf16> to vector<8x16x4xbf16>
    %9 = vector.shape_cast %8 : vector<8x16x4xbf16> to vector<128x4xbf16>
    %10 = vector.extract_strided_slice %1 {offsets = [1, 1, 0], sizes = [8, 16, 4], strides = [1, 1, 1]} : vector<10x18x4xbf16> to vector<8x16x4xbf16>
    %11 = vector.shape_cast %10 : vector<8x16x4xbf16> to vector<128x4xbf16>
    %12 = vector.extract_strided_slice %1 {offsets = [1, 2, 0], sizes = [8, 16, 4], strides = [1, 1, 1]} : vector<10x18x4xbf16> to vector<8x16x4xbf16>
    %13 = vector.shape_cast %12 : vector<8x16x4xbf16> to vector<128x4xbf16>
    %14 = vector.extract_strided_slice %1 {offsets = [2, 0, 0], sizes = [8, 16, 4], strides = [1, 1, 1]} : vector<10x18x4xbf16> to vector<8x16x4xbf16>
    %15 = vector.shape_cast %14 : vector<8x16x4xbf16> to vector<128x4xbf16>
    %16 = vector.extract_strided_slice %1 {offsets = [2, 1, 0], sizes = [8, 16, 4], strides = [1, 1, 1]} : vector<10x18x4xbf16> to vector<8x16x4xbf16>
    %17 = vector.shape_cast %16 : vector<8x16x4xbf16> to vector<128x4xbf16>
    %18 = vector.extract_strided_slice %1 {offsets = [2, 2, 0], sizes = [8, 16, 4], strides = [1, 1, 1]} : vector<10x18x4xbf16> to vector<8x16x4xbf16>
    %19 = vector.shape_cast %18 : vector<8x16x4xbf16> to vector<128x4xbf16>
    %20 = tpu.concatenate %3, %5, %7, %9, %11, %13, %15, %17, %19 in 1 : vector<128x4xbf16>, vector<128x4xbf16>, vector<128x4xbf16>, vector<128x4xbf16>, vector<128x4xbf16>, vector<128x4xbf16>, vector<128x4xbf16>, vector<128x4xbf16>, vector<128x4xbf16> -> vector<128x36xbf16>
    %c0_4 = arith.constant 0 : index
    %c0_5 = arith.constant 0 : index
    %21 = vector.load %arg3[%c0_4, %c0_5] : memref<36x128xbf16, #tpu.memory_space<vmem>>, vector<36x128xbf16>
    %cst = arith.constant dense<0.000000e+00> : vector<128x128xf32>
    %22 = tpu.matmul %20, %21, %cst {dimension_numbers = #tpu.dot_dimension_numbers<[1], [0], [0], [1], [0, 0, 1, 1], [], []>} : vector<128x36xbf16>, vector<36x128xbf16>, vector<128x128xf32> -> vector<128x128xf32>
    %23 = vector.shape_cast %22 : vector<128x128xf32> to vector<8x16x128xf32>
    %cst_6 = arith.constant dense<0.000000e+00> : vector<128xf32>
    %24 = vector.multi_reduction <add>, %23, %cst_6 [0, 1] : vector<8x16x128xf32> to vector<128xf32>
    %c0_7 = arith.constant 0 : index
    %c0_8 = arith.constant 0 : index
    %c0_9 = arith.constant 0 : index
    %c0_10 = arith.constant 0 : index
    %25 = vector.load %arg5[%c0_7, %c0_8, %c0_9, %c0_10] : memref<1x1x2x128xf32, #tpu.memory_space<vmem>>, vector<1x1x1x128xf32>
    %26 = vector.shape_cast %25 : vector<1x1x1x128xf32> to vector<128xf32>
    %27 = vector.shape_cast %24 : vector<128xf32> to vector<1x1x1x128xf32>
    tpu.vector_store %arg5[%c0_7, %c0_8, %c0_9, %c0_10], %27 {strides = array<i32>} : memref<1x1x2x128xf32, #tpu.memory_space<vmem>>, vector<1x1x1x128xf32>,
    %28 = arith.mulf %23, %23 : vector<8x16x128xf32>
    %cst_11 = arith.constant dense<0.000000e+00> : vector<128xf32>
    %29 = vector.multi_reduction <add>, %28, %cst_11 [0, 1] : vector<8x16x128xf32> to vector<128xf32>
    %c0_12 = arith.constant 0 : index
    %c0_13 = arith.constant 0 : index
    %c1 = arith.constant 1 : index
    %c0_14 = arith.constant 0 : index
    %30 = vector.load %arg5[%c0_12, %c0_13, %c1, %c0_14] : memref<1x1x2x128xf32, #tpu.memory_space<vmem>>, vector<1x1x1x128xf32>
    %31 = vector.shape_cast %30 : vector<1x1x1x128xf32> to vector<128xf32>
    %32 = vector.shape_cast %29 : vector<128xf32> to vector<1x1x1x128xf32>
    tpu.vector_store %arg5[%c0_12, %c0_13, %c1, %c0_14], %32 {strides = array<i32>} : memref<1x1x2x128xf32, #tpu.memory_space<vmem>>, vector<1x1x1x128xf32>,
    %33 = vector.shape_cast %23 : vector<8x16x128xf32> to vector<1x8x16x128xf32>
    %c0_15 = arith.constant 0 : index
    %c0_16 = arith.constant 0 : index
    %c0_17 = arith.constant 0 : index
    %c0_18 = arith.constant 0 : index
    %34 = vector.load %arg4[%c0_15, %c0_16, %c0_17, %c0_18] : memref<1x8x16x128xf32, #tpu.memory_space<vmem>>, vector<1x8x16x128xf32>
    tpu.vector_store %arg4[%c0_15, %c0_16, %c0_17, %c0_18], %33 {strides = array<i32>} : memref<1x8x16x128xf32, #tpu.memory_space<vmem>>, vector<1x8x16x128xf32>,
    return
  }
  func.func @transform_0(%arg0: i32, %arg1: i32) -> (i32, i32, i32, i32, i32) {
    %c0_i32 = arith.constant 0 : i32
    %c0_i32_0 = arith.constant 0 : i32
    %c0_i32_1 = arith.constant 0 : i32
    %c0_i32_2 = arith.constant 0 : i32
    return %arg0, %arg1, %c0_i32, %c0_i32_0, %c0_i32_1 : i32, i32, i32, i32, i32
  }
  func.func @transform_1(%arg0: i32, %arg1: i32) -> (i32, i32) {
    %c0_i32 = arith.constant 0 : i32
    %c0_i32_0 = arith.constant 0 : i32
    %c0_i32_1 = arith.constant 0 : i32
    return %c0_i32, %c0_i32_0 : i32, i32
  }
  func.func @transform_2(%arg0: i32, %arg1: i32) -> (i32, i32, i32, i32) {
    %c0_i32 = arith.constant 0 : i32
    %c0_i32_0 = arith.constant 0 : i32
    %c0_i32_1 = arith.constant 0 : i32
    return %arg0, %arg1, %c0_i32, %c0_i32_0 : i32, i32, i32, i32
  }
  func.func @transform_3(%arg0: i32, %arg1: i32) -> (i32, i32, i32, i32) {
    %c0_i32 = arith.constant 0 : i32
    %c0_i32_0 = arith.constant 0 : i32
    %c0_i32_1 = arith.constant 0 : i32
    return %arg0, %arg1, %c0_i32, %c0_i32_0 : i32, i32, i32, i32
  }
}

</mosaic_0001>

<bundles_post_ra>
// kernel: tpu_custom_call.1
= control target key start
LH: loop header
LB: loop body
LE: loop exit
PB: predicated region body
PF: predicated region fallthrough
CT: control target
= control target key end

     0   :  { %9 = vsyncpa [#allocation3], 0  ;;  %s2392_s0 = inlined_call_operand.vmem [shape: bf16[2,2,10,18,4], index: 0, kind: input, shape index: {}]   ;;  %s2393_s1 = inlined_call_operand.vmem [shape: bf16[36,128], index: 1, kind: input, shape index: {}]   ;;  %s2394_s2 = inlined_call_operand.hbm [shape: f32[2,16,16,128], index: 2, kind: output, shape index: {0}]   ;;  %s2395_s3 = inlined_call_operand.hbm [shape: f32[2,2,2,128], index: 3, kind: output, shape index: {1}]  }
   0x1   :  { %11 = vsyncpa [#allocation3 + $0x1], 0 }
   0x2   :  { %12 = vsyncpa [#allocation5], 0 }
   0x3   :  { %14 = vsyncpa [#allocation5 + $0x1], 0  ;;  %s1686_s12 = smov 0   ;;  %s1688_s13 = smov 0  }
   0x4   :  { %s1690_s14 = smov 0   ;;  %s1692_s15 = smov 0  }
   0x5   :  { %s1694_s16 = smov 0   ;;  %s1696_s17 = smov 0  }
   0x6   :  { %s1698_s18 = smov 0   ;;  %s1700_s19 = smov 0  }
   0x7 LB: > { %s1320_s20 = sadd.s32 4294967295, %s1653_s19   ;;  %s1321_s21 = sadd.s32 4294967294, %s1653_s19   ;;  %s1653_s19 = sphi %s1700_s19, %s20_s19   ;;  %s1649_s18 = sphi %s1698_s18, %s2408_s18   ;;  %s1645_s17 = sphi %s1696_s17, %s2407_s17   ;;  %s1641_s16 = sphi %s1694_s16, %s2406_s16   ;;  %s1637_s15 = sphi %s1692_s15, %s2405_s15   ;;  %s1633_s14 = sphi %s1690_s14, %s2404_s14   ;;  %s1629_s13 = sphi %s1688_s13, %s2403_s13   ;;  %s1625_s12 = sphi %s1686_s12, %s2402_s12  }
   0x8   : > { %s29_s22 = sadd.s32 1, %s1645_s17  ;;  %s32_s23 = sadd.s32 1, %s1649_s18 }
   0x9   : > { %p30_p0 = scmp.ge.s32.totalorder %s29_s22, 2  ;;  %p100_p1 = scmp.ne.s32.totalorder %s1633_s14, %s1629_s13 }
   0xa   : > { %p101_p2 = scmp.eq.s32.totalorder %s1320_s20, 3  ;;  %p106_p5 = scmp.ne.s32.totalorder %s1629_s13, %s1625_s12 }
   0xb   : > { %s2410_s22 = smov (%p30_p0, %s29_s22), 0  ;;  %s2412_s23 = smov (!%p30_p0, %s32_s23), %s1649_s18 }
   0xc   : > { %s86_s24 = ssub.s32 %s1645_s17, %s2410_s22  ;;  %p1737_p3 = por %p101_p2, %p100_p1 }
   0xd   : > { %p34_p4 = scmp.ge.s32.totalorder %s2412_s23, 2  ;;  %p107_p6 = scmp.eq.s32.totalorder %s1321_s21, 3 }
   0xe   : > { %p1324_p7 = scmp.ge.s32.totalorder %s1653_s19, 1  ;;  %p168_p9 = scmp.lt.s32.totalorder %s1653_s19, 5 }
   0xf   : > { %s2414_s23 = smov (%p34_p4, %s2412_s23), 0  ;;  %p1746_p8 = por %p107_p6, %p106_p5 }
  0x10   : > { %s85_s27 = ssub.s32 %s1649_s18, %s2414_s23  ;;  %s90_s28 = sadd.s32 1, %s1633_s14 }
  0x11   : > { %s87_s29 = sor.u32 %s86_s24, %s85_s27  ;;  %p169_p10 = pnand %p1324_p7, %p168_p9 }
  0x12   : > { %p88_p11 = scmp.eq.s32.totalorder %s87_s29, 0  ;;  %p201_p12 = scmp.lt.s32.totalorder (!%p169_p10), %s1641_s16, 1 }
  0x13   : > { %172 = sbr.rel (%p169_p10) target bundleno = 522 (0x20a), region = 28  ;;  %p203_p13 = scmp.lt.s32.totalorder (!%p169_p10), %s1637_s15, 1 }
  0x14   : > { %s1755_s30 = scalar_select %p88_p11, %s1633_s14, %s90_s28  }
  0x15   : > { %s1655_s21 = smov (!%p169_p10), 12   ;;  %s1656_s24 = smov (!%p169_p10), 24  }
  0x16   : > { %s1657_s27 = smov (!%p169_p10), 20   ;;  %s1658_s28 = smov (!%p169_p10), 8  }
  0x17   : > { %s1659_s29 = smov (!%p169_p10), 4  }
  0x18   : > { %s202_s4 = scalar_select %p201_p12, %s1641_s16, 1  ;;  %vm461_vm0 = vcmask 1042432   ;;  %vm462_vm1 = vcmask 1046532   ;;  %vm242_vm2 = vsmask.f32 3328  ;;  %vm987_vm6 = vcmask 1041408  }
  0x19   : > { %s204_s5 = scalar_select %p203_p13, %s1637_s15, 1  ;;  %vm243_vm3 = vsmask.f32 7440  ;;  %vm1810_vm4 = vmor %vm461_vm0, %vm462_vm1  ;;  %v1530_v23 = vld [vmem:[%s2393_s1] sm:$0xff]   ;;  %vm806_vm7 = vcmask 31744   ;;  %vm831_vm8 = vcmask 64512  }
  0x1a   : > { %s1432_s6 = smul.u32 60, %s202_s4  ;;  %vm1846_vm5 = vmor %vm242_vm2, %vm243_vm3  ;;  %s1660_s4 = smov 16   ;;  %vm848_vm9 = vcmask 97280   ;;  %vm865_vm10 = vcmask 130048   ;;  %vm882_vm11 = vcmask 162816   ;;  %vm899_vm12 = vcmask 195584  }
  0x1b   : > { %s1431_s7 = smul.u32 30, %s204_s5  ;;  %s1661_s5 = smov 28   ;;  %vm916_vm13 = vcmask 228352   ;;  %vm933_vm14 = vcmask 261120   ;;  %vm970_vm15 = vcmask 293888  }
  0x1d   : > { %s207_s8 = sadd.s32 %s1432_s6, %s1431_s7  ;;  %s1662_s6 = smov 32  }
  0x1e   : > { %s1327_s9 = sshll.u32 %s207_s8, 2 }
  0x1f   : > { %s1764_s20 = scalar_lea.vmem %s2392_s0, %s1327_s9 }
  0x20   : > { %v1767_v0 = vld [vmem:[%s1764_s20 + $0x18] sm:$0xf]  ;;  %v1770_v1 = vld [vmem:[%s1764_s20 + $0x1c] sm:$0xf]  ;;  %v215_v2 = vld [vmem:[%s1764_s20 + $0xc] sm:$0xf] }
  0x21   : > { %v307_v3 = vshrl.u32 %v1770_v1, 16  ;;  %v1776_v4 = vcombine.low %v1767_v0, %v1770_v1  ;;  %v294_v5 = vshrl.u32 %v1767_v0, 16  ;;  %v297_v6 = vshll.u32 %v1767_v0, 16  ;;  %v1781_v7 = vld [vmem:[%s1764_s20 + $0x10] sm:$0xf] }
  0x22   : > { %v279_v8 = vshll.u32 %v1781_v7, 16  ;;  %v283_v9 = vshrl.u32 %v1781_v7, 16  ;;  %v1786_v10 = vcombine.low %v215_v2, %v1781_v7  ;;  %v270_v11 = vshrl.u32 %v215_v2, 16  ;;  %v1789_v12 = vld [vmem:[%s1764_s20 + $0x24] sm:$0xf] }
  0x23   : > { %697 = vrot.lane.b32.xlu1 %v1776_v4, %s1655_s21  ;;  %v273_v13 = vshll.u32 %v215_v2, 16  ;;  %v1794_v14 = vld [vmem:[%s1764_s20 + $0x28] sm:$0xf]  ;;  %v318_v15 = vshrl.u32 %v1789_v12, 16  ;;  %v321_v16 = vshll.u32 %v1789_v12, 16  ;;  %v1329_v17 = vrot.slane %v215_v2, 9 }
  0x24   : > { %v1798_v18 = vrot.slane %v283_v9, 4  ;;  %695 = vrot.lane.b32.xlu0 %v1786_v10, %s1655_s21  ;;  %v272_v19 = vrot.slane %v270_v11, 4  ;;  %v331_v20 = vshrl.u32 %v1794_v14, 16  ;;  %v1805_v21 = vcombine.low %v1789_v12, %v1794_v14  ;;  %v217_v22 = vld [vmem:[%s1764_s20 + $0x14] sm:$0x1] }
  0x25   : > { %v275_v24 = vrot.slane %v273_v13, 5  ;;  %v473_v25 = vrot.slane %v1781_v7, 5  ;;  %v476_v26 = vrot.slane %v217_v22, 5  ;;  %v1816_v27 = vld [vmem:[%s1764_s20] sm:$0xf]  ;;  %v1330_v28 = vrot.slane %v1767_v0, 9 }
  0x26   : > { %v1820_v29 = vld [vmem:[%s1764_s20 + $0x4] sm:$0xf]  ;;  %v214_v30 = vld [vmem:[%s1764_s20 + $0x8] sm:$0x1]  ;;  %v1328_v31 = vrot.slane %v1816_v27, 9  ;;  %v246_v32 = vshrl.u32 %v1816_v27, 16 }
  0x27   : > { %754 = vrot.lane.b32.xlu1 %v1805_v21, %s1656_s24  ;;  %v474_v33 = vsel %vm1810_vm4, %v1329_v17, %v473_v25  ;;  %v475_v34 = vrot.slane %v473_v25, 4  ;;  %v466_v35 = vrot.slane %v1820_v29, 5  ;;  %v469_v36 = vrot.slane %v214_v30, 5  ;;  %v220_v41 = vld [vmem:[%s1764_s20 + $0x20] sm:$0x1] }
  0x28   : > { %752 = vrot.lane.b32.xlu0 %v1776_v4, %s1656_s24  ;;  %v248_v37 = vrot.slane %v246_v32, 4  ;;  %v249_v38 = vshll.u32 %v1816_v27, 16  ;;  %v255_v39 = vshll.u32 %v1820_v29, 16  ;;  %v259_v40 = vshrl.u32 %v1820_v29, 16 }
  0x29   : > { %v477_v42 = vsel %vm1810_vm4, %v475_v34, %v476_v26  ;;  %v467_v43 = vsel %vm1810_vm4, %v1328_v31, %v466_v35  ;;  %v468_v44 = vrot.slane %v466_v35, 4  ;;  %v265_v45 = vshll.u32 %v214_v30, 16  ;;  %v223_v30 = vld [vmem:[%s1764_s20 + $0x2c] sm:$0x1] }
  0x2a   : > { %v1355_v46 = vcombine.low %v474_v33, %v477_v42  ;;  %v251_v47 = vrot.slane %v249_v38, 5  ;;  %v257_v48 = vrot.slane %v255_v39, 5  ;;  %v261_v49 = vrot.slane %v259_v40, 4 }
  0x2b   : > { %v470_v50 = vsel %vm1810_vm4, %v468_v44, %v469_v36  ;;  %v267_v51 = vrot.slane %v265_v45, 5  ;;  %v480_v52 = vrot.slane %v1770_v1, 5  ;;  %v483_v53 = vrot.slane %v220_v41, 5  ;;  %v225_v44 = vld [vmem:[%s1764_s20 + $0x34] sm:$0xf] }
  0x2c   : > { %733 = vrot.lane.b32.xlu0 %v1355_v46, %s1657_s27  ;;  %v1354_v54 = vcombine.low %v467_v43, %v470_v50  ;;  %v252_v55 = vor.u32 %v251_v47, %v248_v37  ;;  %v262_v56 = vor.u32 %v261_v49, %v257_v48  ;;  %v276_v57 = vor.u32 %v275_v24, %v272_v19 }
  0x2d   : > { %v481_v59 = vsel %vm1810_vm4, %v1330_v28, %v480_v52  ;;  %v482_v60 = vrot.slane %v480_v52, 4  ;;  %v281_v61 = vrot.slane %v279_v8, 5  ;;  %v289_v62 = vshll.u32 %v217_v22, 16 }
  0x2e   : > { %676 = vrot.lane.b32.xlu1 %v1354_v54, %s1658_s28  ;;  %v253_v63 = vrot.slane %v252_v55, 4  ;;  %v263_v2 = vrot.slane %v262_v56, 4  ;;  %v277_v9 = vrot.slane %v276_v57, 4  ;;  %v296_v11 = vrot.slane %v294_v5, 4  ;;  %v226_v54 = vld [vmem:[%s1764_s20 + $0x38] sm:$0x1] }
  0x2f   : > { %v484_v13 = vsel %vm1810_vm4, %v482_v60, %v483_v53  ;;  %v286_v17 = vor.u32 %v1798_v18, %v281_v61  ;;  %v291_v19 = vrot.slane %v289_v62, 5  ;;  %v299_v7 = vrot.slane %v297_v6, 5  ;;  %v1904_v60 = vld [vmem:[%s1764_s20 + $0x3c] sm:$0xf] }
  0x30   : > { %v258_v8 = vsel %vm1846_vm5, %v253_v63, %v257_v48  ;;  %v268_v22 = vsel %vm1846_vm5, %v263_v2, %v267_v51  ;;  %v1866_v24 = vcombine.low %v481_v59, %v484_v13  ;;  %v282_v5 = vsel %vm1846_vm5, %v277_v9, %v281_v61 }
  0x31   : > { %v1346_v25 = vcombine.low %v258_v8, %v268_v22  ;;  %v287_v26 = vrot.slane %v286_v17, 4  ;;  %v300_v28 = vor.u32 %v299_v7, %v296_v11  ;;  %v303_v18 = vshll.u32 %v1770_v1, 16  ;;  %v1913_v11 = vld [vmem:[%s1764_s20 + $0x40] sm:$0xf] }
  0x32   : > { %678 = vrot.lane.b32.xlu1 %v1355_v46, %s1658_s28  ;;  %v309_v0 = vrot.slane %v307_v3, 4  ;;  %v313_v6 = vshll.u32 %v220_v41, 16  ;;  %v320_v31 = vrot.slane %v318_v15, 4  ;;  %v323_v32 = vrot.slane %v321_v16, 5  ;;  %v1886_v15 = vld [vmem:[%s1764_s20 + $0x30] sm:$0xf] }
  0x33   : > { %636 = vrot.lane.b32.xlu0 %v1346_v25, %s1659_s29  ;;  %v292_v33 = vsel %vm1846_vm5, %v287_v26, %v291_v19  ;;  %v301_v34 = vrot.slane %v300_v28, 4  ;;  %v305_v35 = vrot.slane %v303_v18, 5  ;;  %v327_v1 = vshll.u32 %v1794_v14, 16 }
  0x34   : > { %v1347_v3 = vcombine.low %v282_v5, %v292_v33  ;;  %v324_v36 = vor.u32 %v323_v32, %v320_v31  ;;  %v333_v37 = vrot.slane %v331_v20, 4  ;;  %v315_v16 = vrot.slane %v313_v6, 5  ;;  %v1925_v6 = vld [vmem:[%s1764_s20 + $0x44] sm:$0x1] }
  0x35   : > { %v310_v38 = vor.u32 %v309_v0, %v305_v35  ;;  %v329_v39 = vrot.slane %v327_v1, 5  ;;  %v337_v40 = vshll.u32 %v223_v30, 16  ;;  %v306_v41 = vsel %vm1846_vm5, %v301_v34, %v305_v35  ;;  %v1934_v1 = vld [vmem:[%s1764_s20 + $0x48] sm:$0xf] }
  0x36   : > { %735 = vrot.lane.b32.xlu1 %v1866_v24, %s1657_s27  ;;  %v325_v42 = vrot.slane %v324_v36, 4  ;;  %v487_v43 = vrot.slane %v1794_v14, 5  ;;  %v342_v47 = vshrl.u32 %v1886_v15, 16  ;;  %v1331_v48 = vrot.slane %v1789_v12, 9 }
  0x37   : > { %638 = vrot.lane.b32.xlu0 %v1347_v3, %s1659_s29  ;;  %v311_v20 = vrot.slane %v310_v38, 4  ;;  %v334_v45 = vor.u32 %v333_v37, %v329_v39  ;;  %v339_v46 = vrot.slane %v337_v40, 5  ;;  %v490_v49 = vrot.slane %v223_v30, 5 }
  0x38   : > { %v345_v50 = vshll.u32 %v1886_v15, 16  ;;  %v330_v14 = vsel %vm1846_vm5, %v325_v42, %v329_v39  ;;  %v355_v53 = vshrl.u32 %v225_v44, 16  ;;  %v489_v56 = vrot.slane %v487_v43, 4 }
  0x39   : > { %v316_v51 = vsel %vm1846_vm5, %v311_v20, %v315_v16  ;;  %v335_v52 = vrot.slane %v334_v45, 4  ;;  %v344_v57 = vrot.slane %v342_v47, 4  ;;  %v351_v61 = vshll.u32 %v225_v44, 16  ;;  %v1942_v16 = vld [vmem:[%s1764_s20 + $0x4c] sm:$0xf] }
  0x3a   : > { %v1348_v55 = vcombine.low %v306_v41, %v316_v51  ;;  %v347_v59 = vrot.slane %v345_v50, 5  ;;  %v357_v62 = vrot.slane %v355_v53, 4  ;;  %v361_v9 = vshll.u32 %v226_v54, 16 }
  0x3b   : > { %714 = vrot.lane.b32.xlu0 %v1347_v3, %s1660_s4  ;;  %v340_v12 = vsel %vm1846_vm5, %v335_v52, %v339_v46  ;;  %v488_v13 = vsel %vm1810_vm4, %v1331_v48, %v487_v43  ;;  %v353_v17 = vrot.slane %v351_v61, 5  ;;  %v494_v19 = vrot.slane %v225_v44, 5 }
  0x3c   : > { %716 = vrot.lane.b32.xlu1 %v1348_v55, %s1660_s4  ;;  %v1910_v63 = vcombine.low %v330_v14, %v340_v12  ;;  %v348_v2 = vor.u32 %v347_v59, %v344_v57  ;;  %v366_v7 = vshrl.u32 %v1904_v60, 16  ;;  %v491_v8 = vsel %vm1810_vm4, %v489_v56, %v490_v49  ;;  %v232_v49 = vld [vmem:[%s1764_s20 + $0x50] sm:$0x1]  ;;  %v1978_v57 = vld [vmem:[%s1764_s20 + $0x54] sm:$0xf] }
  0x3d   : > { %v1332_v22 = vrot.slane %v1886_v15, 9  ;;  %v497_v5 = vrot.slane %v226_v54, 5  ;;  %v369_v25 = vshll.u32 %v1904_v60, 16  ;;  %v358_v28 = vor.u32 %v357_v62, %v353_v17 }
  0x3e   : > { %v349_v26 = vrot.slane %v348_v2, 4  ;;  %v496_v18 = vrot.slane %v494_v19, 4  ;;  %v379_v0 = vshrl.u32 %v1913_v11, 16  ;;  %v363_v30 = vrot.slane %v361_v9, 5 }
  0x3f   : > { %771 = vrot.lane.b32.xlu0 %v1348_v55, %s1661_s5  ;;  %v368_v31 = vrot.slane %v366_v7, 4  ;;  %v371_v32 = vrot.slane %v369_v25, 5  ;;  %v375_v33 = vshll.u32 %v1913_v11, 16  ;;  %v1931_v34 = vcombine.low %v1886_v15, %v225_v44 }
  0x40   : > { %773 = vrot.lane.b32.xlu1 %v1910_v63, %s1661_s5  ;;  %v359_v35 = vrot.slane %v358_v28, 4  ;;  %v495_v3 = vsel %vm1810_vm4, %v1332_v22, %v494_v19  ;;  %v498_v36 = vsel %vm1810_vm4, %v496_v18, %v497_v5  ;;  %v385_v38 = vshll.u32 %v1925_v6, 16  ;;  %v1994_v19 = vld [vmem:[%s1764_s20 + $0x58] sm:$0xf] }
  0x41   : > { %v372_v37 = vor.u32 %v371_v32, %v368_v31  ;;  %v1946_v15 = vcombine.low %v488_v13, %v491_v8  ;;  %v354_v39 = vsel %vm1846_vm5, %v349_v26, %v353_v17  ;;  %v1952_v40 = vcombine.low %v1904_v60, %v1913_v11 }
  0x42   : > { %v381_v41 = vrot.slane %v379_v0, 4  ;;  %v364_v42 = vsel %vm1846_vm5, %v359_v35, %v363_v30  ;;  %v1957_v43 = vrot.slane %v375_v33, 5  ;;  %v501_v44 = vrot.slane %v1913_v11, 5  ;;  %v235_v0 = vld [vmem:[%s1764_s20 + $0x5c] sm:$0x1] }
  0x43   : > { %790 = vrot.lane.b32.xlu0 %v1866_v24, %s1662_s6  ;;  %v390_v20 = vshrl.u32 %v1934_v1, 16  ;;  %v1961_v45 = vcombine.low %v495_v3, %v498_v36  ;;  %v1963_v46 = vrot.slane %v372_v37, 4  ;;  %v393_v47 = vshll.u32 %v1934_v1, 16 }
  0x44   : > { %640 = vrot.lane.b32.xlu1 %v1348_v55, %s1659_s29  ;;  %v403_v48 = vshrl.u32 %v1942_v16, 16  ;;  %v1968_v50 = vrot.slane %v385_v38, 5  ;;  %v1333_v51 = vrot.slane %v1904_v60, 9  ;;  %v504_v14 = vrot.slane %v1925_v6, 5 }
  0x45   : > { %v392_v52 = vrot.slane %v390_v20, 4  ;;  %v1974_v53 = vcombine.low %v354_v39, %v364_v42  ;;  %v395_v54 = vrot.slane %v393_v47, 5  ;;  %v399_v55 = vshll.u32 %v1942_v16, 16  ;;  %v2014_v42 = vld [vmem:[%s1764_s20 + $0x60] sm:$0xf] }
  0x46   : > { %v405_v56 = vrot.slane %v403_v48, 4  ;;  %v382_v59 = vor.u32 %v381_v41, %v1957_v43  ;;  %v1985_v12 = vrot.slane %v501_v44, 4  ;;  %v409_v61 = vshll.u32 %v232_v49, 16 }
  0x47   : > { %792 = vrot.lane.b32.xlu0 %v1946_v15, %s1662_s6  ;;  %v1334_v62 = vrot.slane %v1934_v1, 9  ;;  %v378_v2 = vsel %vm1846_vm5, %v1963_v46, %v1957_v43  ;;  %v396_v9 = vor.u32 %v395_v54, %v392_v52  ;;  %v401_v13 = vrot.slane %v399_v55, 5  ;;  %v2023_v52 = vld [vmem:[%s1764_s20 + $0x64] sm:$0xf] }
  0x48   : > { %642 = vrot.lane.b32.xlu1 %v1910_v63, %s1659_s29  ;;  %v508_v17 = vrot.slane %v1942_v16, 5  ;;  %v411_v7 = vrot.slane %v409_v61, 5  ;;  %v511_v8 = vrot.slane %v232_v49, 5  ;;  %v414_v22 = vshrl.u32 %v1978_v57, 16 }
  0x49   : > { %v417_v5 = vshll.u32 %v1978_v57, 16  ;;  %v397_v25 = vrot.slane %v396_v9, 4  ;;  %v406_v26 = vor.u32 %v405_v56, %v401_v13  ;;  %v383_v30 = vrot.slane %v382_v59, 4 }
  0x4a   : > { %v509_v28 = vsel %vm1810_vm4, %v1334_v62, %v508_v17  ;;  %v510_v18 = vrot.slane %v508_v17, 4  ;;  %v427_v31 = vshrl.u32 %v1994_v19, 16  ;;  %v416_v32 = vrot.slane %v414_v22, 4  ;;  %v238_v17 = vld [vmem:[%s1764_s20 + $0x68] sm:$0x1] }
  0x4b   : > { %680 = vrot.lane.b32.xlu0 %v1866_v24, %s1658_s28  ;;  %v419_v33 = vrot.slane %v417_v5, 5  ;;  %v402_v24 = vsel %vm1846_vm5, %v397_v25, %v401_v13  ;;  %v407_v35 = vrot.slane %v406_v26, 4  ;;  %v423_v36 = vshll.u32 %v1994_v19, 16 }
  0x4c   : > { %682 = vrot.lane.b32.xlu1 %v1946_v15, %s1658_s28  ;;  %v512_v3 = vsel %vm1810_vm4, %v510_v18, %v511_v8  ;;  %v429_v39 = vrot.slane %v427_v31, 4  ;;  %v433_v41 = vshll.u32 %v235_v0, 16  ;;  %v1335_v48 = vrot.slane %v1978_v57, 9 }
  0x4d   : > { %v2011_v37 = vcombine.low %v509_v28, %v512_v3  ;;  %v420_v38 = vor.u32 %v419_v33, %v416_v32  ;;  %v412_v20 = vsel %vm1846_vm5, %v407_v35, %v411_v7  ;;  %v425_v47 = vrot.slane %v423_v36, 5  ;;  %v2050_v32 = vld [vmem:[%s1764_s20 + $0x6c] sm:$0xf]  ;;  %v2057_v3 = vld [vmem:[%s1764_s20 + $0x70] sm:$0xf] }
  0x4e   : > { %v515_v49 = vrot.slane %v1994_v19, 5  ;;  %v2027_v54 = vcombine.low %v402_v24, %v412_v20  ;;  %v435_v56 = vrot.slane %v433_v41, 5  ;;  %v518_v59 = vrot.slane %v235_v0, 5 }
  0x4f   : > { %699 = vrot.lane.b32.xlu0 %v1805_v21, %s1655_s21  ;;  %v421_v55 = vrot.slane %v420_v38, 4  ;;  %v430_v61 = vor.u32 %v429_v39, %v425_v47  ;;  %v521_v13 = vshrl.u32 %v2014_v42, 16  ;;  %v388_v7 = vsel %vm1846_vm5, %v383_v30, %v1968_v50 }
  0x50   : > { %701 = vrot.lane.b32.xlu1 %v1931_v34, %s1655_s21  ;;  %v516_v62 = vsel %vm1810_vm4, %v1335_v48, %v515_v49  ;;  %v517_v9 = vrot.slane %v515_v49, 4  ;;  %v524_v22 = vshll.u32 %v2014_v42, 16  ;;  %v534_v5 = vshrl.u32 %v2023_v52, 16 }
  0x51   : > { %v426_v8 = vsel %vm1846_vm5, %v421_v55, %v425_v47  ;;  %v431_v25 = vrot.slane %v430_v61, 4  ;;  %v523_v28 = vrot.slane %v521_v13, 4  ;;  %v530_v18 = vshll.u32 %v2023_v52, 16  ;;  %v241_v61 = vld [vmem:[%s1764_s20 + $0x74] sm:$0x1] }
  0x52   : > { %v519_v26 = vsel %vm1810_vm4, %v517_v9, %v518_v59  ;;  %v526_v0 = vrot.slane %v524_v22, 5  ;;  %v536_v30 = vrot.slane %v534_v5, 4  ;;  %v540_v31 = vshll.u32 %v238_v17, 16 }
  0x53   : > { %718 = vrot.lane.b32.xlu0 %v1910_v63, %s1660_s4  ;;  %v2047_v50 = vcombine.low %v516_v62, %v519_v26  ;;  %v436_v63 = vsel %vm1846_vm5, %v431_v25, %v435_v56  ;;  %v532_v33 = vrot.slane %v530_v18, 5  ;;  %v1336_v24 = vrot.slane %v2014_v42, 9 }
  0x54   : > { %720 = vrot.lane.b32.xlu1 %v1974_v53, %s1660_s4  ;;  %v549_v35 = vrot.slane %v2023_v52, 5  ;;  %v2059_v36 = vcombine.low %v426_v8, %v436_v63  ;;  %v527_v38 = vor.u32 %v526_v0, %v523_v28  ;;  %v542_v39 = vrot.slane %v540_v31, 5 }
  0x55   : > { %v552_v41 = vrot.slane %v238_v17, 5  ;;  %v537_v20 = vor.u32 %v536_v30, %v532_v33  ;;  %v555_v49 = vshrl.u32 %v2050_v32, 16  ;;  %v2073_v55 = vcombine.low %v378_v2, %v388_v7 }
  0x56   : > { %v550_v47 = vsel %vm1810_vm4, %v1336_v24, %v549_v35  ;;  %v551_v48 = vrot.slane %v549_v35, 4  ;;  %v528_v56 = vrot.slane %v527_v38, 4  ;;  %v568_v59 = vshrl.u32 %v2057_v3, 16 }
  0x57   : > { %737 = vrot.lane.b32.xlu0 %v1946_v15, %s1657_s27  ;;  %v558_v15 = vshll.u32 %v2050_v32, 16  ;;  %v538_v62 = vrot.slane %v537_v20, 4  ;;  %v557_v13 = vrot.slane %v555_v49, 4  ;;  %v564_v17 = vshll.u32 %v2057_v3, 16  ;;  %v1529_v20 = vld [vmem:[%s2393_s1 + $0x8] sm:$0xff]  }
  0x58   : > { %739 = vrot.lane.b32.xlu1 %v1961_v45, %s1657_s27  ;;  %v553_v9 = vsel %vm1810_vm4, %v551_v48, %v552_v41  ;;  %v533_v8 = vsel %vm1846_vm5, %v528_v56, %v532_v33  ;;  %v570_v46 = vrot.slane %v568_v59, 4  ;;  %v574_v5 = vshll.u32 %v241_v61, 16  ;;  %v1528_v33 = vld [vmem:[%s2393_s1 + $0x10] ss:$0 sps:$4 sm:$0x33]  }
  0x59   : > { %v2083_v22 = vcombine.low %v550_v47, %v553_v9  ;;  %v560_v43 = vrot.slane %v558_v15, 5  ;;  %v543_v2 = vsel %vm1846_vm5, %v538_v62, %v542_v39  ;;  %v566_v7 = vrot.slane %v564_v17, 5  ;;  %1429 = vmatprep.subr.msk.bf16.mxu0 %vm987_vm6, %v1528_v33  ;;  %1430 = vmatprep.subr.msk.bf16.mxu1 %vm987_vm6, %v1528_v33 }
  0x5a   : > { %v1337_v25 = vrot.slane %v2050_v32, 9  ;;  %v2092_v26 = vcombine.low %v533_v8, %v543_v2  ;;  %v583_v18 = vrot.slane %v2057_v3, 5  ;;  %v586_v0 = vrot.slane %v241_v61, 5 }
  0x5b   : > { %756 = vrot.lane.b32.xlu0 %v1931_v34, %s1656_s24  ;;  %v561_v28 = vor.u32 %v560_v43, %v557_v13  ;;  %v571_v30 = vor.u32 %v570_v46, %v566_v7  ;;  %v576_v31 = vrot.slane %v574_v5, 5  ;;  %v1338_v63 = vcombine.low %v1816_v27, %v1820_v29 }
  0x5c   : > { %758 = vrot.lane.b32.xlu1 %v1952_v40, %s1656_s24  ;;  %v2102_v35 = vsel %vm1810_vm4, %v1337_v25, %v583_v18  ;;  %v585_v38 = vrot.slane %v583_v18, 4  ;;  %v502_v39 = vsel %vm1810_vm4, %v1333_v51, %v501_v44  ;;  %v505_v47 = vsel %vm1810_vm4, %v1985_v12, %v504_v14 }
  0x5d   : > { %v562_v24 = vrot.slane %v561_v28, 4  ;;  %v572_v41 = vrot.slane %v571_v30, 4  ;;  %v989_v6 = vsel %vm987_vm6, %v1528_v33, 0  ;;  %v1359_v14 = vcombine.low %v502_v39, %v505_v47 }
  0x5e   : > { %v2126_v11 = vsel %vm1810_vm4, %v585_v38, %v586_v0  ;;  %1402 = vmatpush3.bf16.msra.mxu0 %v989_v6  ;;  %1426 = vmatpush3.bf16.msra.mxu1 %v989_v6  ;;  %v2147_v58 = vcombine.low %v1934_v1, %v1942_v16  ;;  %v2162_v1 = vcombine.low %v1978_v57, %v1994_v19 }
  0x5f   : > { %775 = vrot.lane.b32.xlu0 %v1974_v53, %s1661_s5  ;;  %v567_v60 = vsel %vm1846_vm5, %v562_v24, %v566_v7  ;;  %v577_v44 = vsel %vm1846_vm5, %v572_v41, %v576_v31  ;;  %v1367_v51 = vcombine.low %v2102_v35, %v2126_v11  ;;  %1403 = vmatprep.subr.bf16.mxu0 %v1529_v20 }
  0x60   : > { %777 = vrot.lane.b32.xlu1 %v2073_v55, %s1661_s5  ;;  %v1366_v48 = vcombine.low %v567_v60, %v577_v44  ;;  %1424 = vmatprep.subr.bf16.mxu1 %v1529_v20  ;;  %v1362_v16 = vcombine.low %v2014_v42, %v2023_v52  ;;  %v1365_v57 = vcombine.low %v2050_v32, %v2057_v3 }
  0x62   : > { %1404 = vmatpush3.bf16.msra.mxu0 %v1529_v20  ;;  %1427 = vmatpush3.bf16.msra.mxu1 %v1529_v20 }
  0x63   : > { %794 = vrot.lane.b32.xlu0 %v1961_v45, %s1662_s6  ;;  %1405 = vmatprep.subr.bf16.mxu0 %v1530_v23 }
  0x64   : > { %644 = vrot.lane.b32.xlu1 %v1974_v53, %s1659_s29  ;;  %1425 = vmatprep.subr.bf16.mxu1 %v1530_v23 }
  0x66   : > { %1406 = vmatpush3.bf16.msra.mxu0 %v1530_v23  ;;  %1428 = vmatpush3.bf16.msra.mxu1 %v1530_v23 }
  0x67   : > { %796 = vrot.lane.b32.xlu0 %v1359_v14, %s1662_s6 }
  0x68   : > { %646 = vrot.lane.b32.xlu1 %v2073_v55, %s1659_s29 }
  0x6b   : > { %684 = vrot.lane.b32.xlu0 %v1961_v45, %s1658_s28 }
  0x6c   : > { %686 = vrot.lane.b32.xlu1 %v1359_v14, %s1658_s28 }
  0x6f   : > { %703 = vrot.lane.b32.xlu0 %v1952_v40, %s1655_s21 }
  0x70   : > { %705 = vrot.lane.b32.xlu1 %v2147_v58, %s1655_s21 }
  0x73   : > { %722 = vrot.lane.b32.xlu0 %v2073_v55, %s1660_s4 }
  0x74   : > { %724 = vrot.lane.b32.xlu1 %v2027_v54, %s1660_s4 }
  0x77   : > { %741 = vrot.lane.b32.xlu0 %v1359_v14, %s1657_s27 }
  0x78   : > { %743 = vrot.lane.b32.xlu1 %v2011_v37, %s1657_s27 }
  0x7b   : > { %760 = vrot.lane.b32.xlu0 %v2147_v58, %s1656_s24 }
  0x7c   : > { %762 = vrot.lane.b32.xlu1 %v2162_v1, %s1656_s24 }
  0x7f   : > { %779 = vrot.lane.b32.xlu0 %v2027_v54, %s1661_s5 }
  0x80   : > { %781 = vrot.lane.b32.xlu1 %v2059_v36, %s1661_s5 }
  0x83   : > { %798 = vrot.lane.b32.xlu0 %v2011_v37, %s1662_s6 }
  0x84   : > { %648 = vrot.lane.b32.xlu1 %v2027_v54, %s1659_s29 }
  0x87   : > { %800 = vrot.lane.b32.xlu0 %v2047_v50, %s1662_s6 }
  0x88   : > { %650 = vrot.lane.b32.xlu1 %v2059_v36, %s1659_s29  ;;  %s1389_s29 = sshll.u32 %s1637_s15, 4 }
  0x8b   : > { %688 = vrot.lane.b32.xlu0 %v2011_v37, %s1658_s28 }
  0x8c   : > { %690 = vrot.lane.b32.xlu1 %v2047_v50, %s1658_s28 }
  0x8f   : > { %707 = vrot.lane.b32.xlu0 %v2162_v1, %s1655_s21 }
  0x90   : > { %709 = vrot.lane.b32.xlu1 %v1362_v16, %s1655_s21  ;;  %s2290_s21 = sand.u32 1, %s1629_s13  }
  0x91   : > { %s1165_s11 = scalar_lea.sflag [#allocation3], %s2290_s21 }
  0x93   : > { %726 = vrot.lane.b32.xlu0 %v2059_v36, %s1660_s4 }
  0x94   : > { %728 = vrot.lane.b32.xlu1 %v2092_v26, %s1660_s4  ;;  %s1383_s4 = sshll.u32 %s1641_s16, 5 }
  0x95   : > { %v698_v45 = vpop.permute.xlu1 %697 }
  0x96   : > { %v696_v53 = vpop.permute.xlu0 %695 }
  0x97   : > { %745 = vrot.lane.b32.xlu0 %v2047_v50, %s1657_s27 }
  0x98   : > { %747 = vrot.lane.b32.xlu1 %v2083_v22, %s1657_s27 }
  0x99   : > { %v755_v12 = vpop.permute.xlu1 %754 }
  0x9a   : > { %v753_v19 = vpop.permute.xlu0 %752 }
  0x9b   : > { %764 = vrot.lane.b32.xlu0 %v1362_v16, %s1656_s24 }
  0x9c   : > { %766 = vrot.lane.b32.xlu1 %v1365_v57, %s1656_s24  ;;  %s1325_s24 = sshll.u32 %s2290_s21, 7 }
  0x9d   : > { %s2293_s27 = scalar_lea.vmem [#allocation2], %s1325_s24  ;;  %s1663_s24 = smov [#allocation2]  }
  0x9e   : > { %v734_v37 = vpop.permute.xlu0 %733 }
  0x9f   : > { %783 = vrot.lane.b32.xlu0 %v2092_v26, %s1661_s5 }
  0xa0   : > { %785 = vrot.lane.b32.xlu1 %v1366_v48, %s1661_s5  ;;  %v677_v42 = vpop.permute.xlu1 %676  ;;  %s1183_s5 = sadd.s32 %s1389_s29, %s1383_s4  ;;  %s1535_s29 = sshll.u32 %s1663_s24, 4  ;;  %s1536_s29 = int_to_ptr.vmem [resolvable:$false] %s1535_s29 }
  0xa1   : > { %s1384_s7 = sshll.u32 %s1183_s5, 7  ;;  %s1537_s4 = scalar_lea.vmem %s1536_s29, 4096 }
  0xa2   : > { %s2318_s10 = scalar_lea.hbm %s2394_s2, %s1384_s7 }
  0xa3   : > { %802 = vrot.lane.b32.xlu0 %v2083_v22, %s1662_s6 }
  0xa4   : > { %804 = vrot.lane.b32.xlu1 %v1367_v51, %s1662_s6  ;;  %v679_v52 = vpop.permute.xlu1 %678  ;;  %s1186_s6 = sshll.u32 %s2293_s27, 4  ;;  %s2312_s6 = int_to_ptr.vmem [resolvable:$true] %s1186_s6 }
  0xa5   : > { %v637_v54 = vpop.permute.xlu0 %636  ;;  %s1531_s20 = scalar_lea.vmem %s2312_s6, 2048  ;;  %p1538_p4 = scmp.lt.s32.totalorder %s2312_s6, %s1536_s29 }
  0xa6   : > { %v809_v50 = vsel %vm806_vm7, %v1338_v63, %v637_v54  ;;  %p1532_p0 = scmp.ne.s32.totalorder %s2312_s6, %s1531_s20  ;;  %p1539_p5 = scmp.lt.s32.totalorder %s1537_s4, %s1531_s20 }
  0xa7   : > { %v833_v36 = vsel %vm831_vm8, %v809_v50, %v677_v42 }
  0xa8   : > { %v736_v32 = vpop.permute.xlu1 %735  ;;  %v850_v15 = vsel %vm848_vm9, %v833_v36, %v696_v53  ;;  %p1533_p1 = pnand %p1532_p0, %p1737_p3  ;;  %p1540_p6 = por %p1539_p5, %p1538_p4 }
  0xa9   : > { %v639_v3 = vpop.permute.xlu0 %638 }
  0xaa   : > { %v812_v49 = vsel %vm806_vm7, %v1786_v10, %v639_v3  ;;  %p1534_p2 = pneg %p1533_p1 }
  0xab   : > { %v835_v55 = vsel %vm831_vm8, %v812_v49, %v679_v52 }
  0xac   : > { %v852_v56 = vsel %vm848_vm9, %v835_v55, %v698_v45  ;;  %p1541_p7 = pnand %p1540_p6, %p1534_p2 }
  0xad   : > { %v715_v59 = vpop.permute.xlu0 %714 }
  0xae   : > { %v717_v27 = vpop.permute.xlu1 %716  ;;  %v867_v29 = vsel %vm865_vm10, %v850_v15, %v715_v59 }
  0xaf   : > { %v884_v61 = vsel %vm882_vm11, %v867_v29, %v734_v37  ;;  %v869_v62 = vsel %vm865_vm10, %v852_v56, %v717_v27 }
  0xb0   : > { %v901_v13 = vsel %vm899_vm12, %v884_v61, %v753_v19  ;;  %v886_v17 = vsel %vm882_vm11, %v869_v62, %v736_v32 }
  0xb1   : > { %v772_v9 = vpop.permute.xlu0 %771  ;;  %v903_v43 = vsel %vm899_vm12, %v886_v17, %v755_v12 }
  0xb2   : > { %v774_v10 = vpop.permute.xlu1 %773  ;;  %v918_v8 = vsel %vm916_vm13, %v901_v13, %v772_v9 }
  0xb3   : > { %v920_v7 = vsel %vm916_vm13, %v903_v43, %v774_v10 }
  0xb5   : > { %v791_v22 = vpop.permute.xlu0 %790 }
  0xb6   : > { %v641_v46 = vpop.permute.xlu1 %640  ;;  %v935_v2 = vsel %vm933_vm14, %v918_v8, %v791_v22 }
  0xb7   : > { %1407 = vmatprep.mubr.msk.bf16.mxu0 %vm970_vm15, %v935_v2  ;;  %v815_v39 = vsel %vm806_vm7, %v1776_v4, %v641_v46 }
  0xb9   : > { %v793_v5 = vpop.permute.xlu0 %792 }
  0xba   : > { %v643_v25 = vpop.permute.xlu1 %642  ;;  %v937_v26 = vsel %vm933_vm14, %v920_v7, %v793_v5 }
  0xbb   : > { %1408 = vmatmul.mubr.msk.bf16.vlgmr.msra.gmra.mxu0 %vm970_vm15, %v937_v26  ;;  %v818_v44 = vsel %vm806_vm7, %v1805_v21, %v643_v25 }
  0xbd   : > { %v681_v28 = vpop.permute.xlu0 %680 }
  0xbe   : > { %v683_v18 = vpop.permute.xlu1 %682  ;;  %v837_v41 = vsel %vm831_vm8, %v815_v39, %v681_v28 }
  0xbf   : > { %v839_v6 = vsel %vm831_vm8, %v818_v44, %v683_v18 }
  0xc1   : > { %v700_v0 = vpop.permute.xlu0 %699 }
  0xc2   : > { %v702_v30 = vpop.permute.xlu1 %701  ;;  %v854_v20 = vsel %vm848_vm9, %v837_v41, %v700_v0 }
  0xc3   : > { %v856_v14 = vsel %vm848_vm9, %v839_v6, %v702_v30 }
  0xc5   : > { %v719_v31 = vpop.permute.xlu0 %718 }
  0xc6   : > { %v721_v63 = vpop.permute.xlu1 %720  ;;  %v871_v60 = vsel %vm865_vm10, %v854_v20, %v719_v31 }
  0xc7   : > { %v873_v16 = vsel %vm865_vm10, %v856_v14, %v721_v63 }
  0xc9   : > { %v738_v33 = vpop.permute.xlu0 %737 }
  0xca   : > { %v740_v24 = vpop.permute.xlu1 %739  ;;  %v888_v51 = vsel %vm882_vm11, %v871_v60, %v738_v33 }
  0xcb   : > { %v890_v57 = vsel %vm882_vm11, %v873_v16, %v740_v24 }
  0xcd   : > { %v757_v35 = vpop.permute.xlu0 %756 }
  0xce   : > { %v759_v38 = vpop.permute.xlu1 %758  ;;  %v905_v48 = vsel %vm899_vm12, %v888_v51, %v757_v35 }
  0xcf   : > { %v907_v21 = vsel %vm899_vm12, %v890_v57, %v759_v38 }
  0xd1   : > { %v776_v47 = vpop.permute.xlu0 %775 }
  0xd2   : > { %v778_v11 = vpop.permute.xlu1 %777  ;;  %v922_v4 = vsel %vm916_vm13, %v905_v48, %v776_v47 }
  0xd3   : > { %v924_v12 = vsel %vm916_vm13, %v907_v21, %v778_v11 }
  0xd5   : > { %v795_v23 = vpop.permute.xlu0 %794 }
  0xd6   : > { %v645_v45 = vpop.permute.xlu1 %644  ;;  %v939_v53 = vsel %vm933_vm14, %v922_v4, %v795_v23 }
  0xd7   : > { %1411 = vmatprep.mubr.msk.bf16.mxu0 %vm970_vm15, %v939_v53  ;;  %v821_v59 = vsel %vm806_vm7, %v1931_v34, %v645_v45 }
  0xd9   : > { %v797_v19 = vpop.permute.xlu0 %796 }
  0xda   : > { %v647_v37 = vpop.permute.xlu1 %646  ;;  %v941_v42 = vsel %vm933_vm14, %v924_v12, %v797_v19 }
  0xdb   : > { %1412 = vmatmul.mubr.msk.bf16.gmra.mxu0 %vm970_vm15, %v941_v42  ;;  %v824_v10 = vsel %vm806_vm7, %v1952_v40, %v647_v37 }
  0xdd   : > { %v685_v52 = vpop.permute.xlu0 %684 }
  0xde   : > { %v687_v54 = vpop.permute.xlu1 %686  ;;  %v841_v27 = vsel %vm831_vm8, %v821_v59, %v685_v52 }
  0xdf   : > { %v843_v17 = vsel %vm831_vm8, %v824_v10, %v687_v54 }
  0xe1   : > { %v704_v50 = vpop.permute.xlu0 %703 }
  0xe2   : > { %v706_v32 = vpop.permute.xlu1 %705  ;;  %v858_v29 = vsel %vm848_vm9, %v841_v27, %v704_v50 }
  0xe3   : > { %v860_v22 = vsel %vm848_vm9, %v843_v17, %v706_v32 }
  0xe5   : > { %v723_v3 = vpop.permute.xlu0 %722 }
  0xe6   : > { %v725_v36 = vpop.permute.xlu1 %724  ;;  %v875_v62 = vsel %vm865_vm10, %v858_v29, %v723_v3 }
  0xe7   : > { %v877_v46 = vsel %vm865_vm10, %v860_v22, %v725_v36 }
  0xe9   : > { %v742_v49 = vpop.permute.xlu0 %741 }
  0xea   : > { %v744_v55 = vpop.permute.xlu1 %743  ;;  %v892_v13 = vsel %vm882_vm11, %v875_v62, %v742_v49 }
  0xeb   : > { %v894_v5 = vsel %vm882_vm11, %v877_v46, %v744_v55 }
  0xed   : > { %v761_v56 = vpop.permute.xlu0 %760 }
  0xee   : > { %v763_v15 = vpop.permute.xlu1 %762  ;;  %v909_v8 = vsel %vm899_vm12, %v892_v13, %v761_v56 }
  0xef   : > { %v911_v40 = vsel %vm899_vm12, %v894_v5, %v763_v15 }
  0xf1   : > { %v780_v61 = vpop.permute.xlu0 %779 }
  0xf2   : > { %v782_v9 = vpop.permute.xlu1 %781  ;;  %v926_v34 = vsel %vm916_vm13, %v909_v8, %v780_v61 }
  0xf3   : > { %v928_v25 = vsel %vm916_vm13, %v911_v40, %v782_v9 }
  0xf5   : > { %v799_v43 = vpop.permute.xlu0 %798 }
  0xf6   : > { %v649_v2 = vpop.permute.xlu1 %648  ;;  %v943_v7 = vsel %vm933_vm14, %v926_v34, %v799_v43 }
  0xf7   : > { %1415 = vmatprep.mubr.msk.bf16.mxu1 %vm970_vm15, %v943_v7  ;;  %v827_v20 = vsel %vm806_vm7, %v2147_v58, %v649_v2 }
  0xf9   : > { %v801_v26 = vpop.permute.xlu0 %800 }
  0xfa   : > { %v651_v28 = vpop.permute.xlu1 %650  ;;  %v945_v18 = vsel %vm933_vm14, %v928_v25, %v801_v26 }
  0xfb   : > { %1416 = vmatmul.mubr.msk.bf16.vlgmr.msra.gmra.mxu1 %vm970_vm15, %v945_v18  ;;  %v830_v47 = vsel %vm806_vm7, %v2162_v1, %v651_v28 }
  0xfd   : > { %v689_v0 = vpop.permute.xlu0 %688 }
  0xfe   : > { %v691_v30 = vpop.permute.xlu1 %690  ;;  %v845_v60 = vsel %vm831_vm8, %v827_v20, %v689_v0 }
  0xff   : > { %v847_v11 = vsel %vm831_vm8, %v830_v47, %v691_v30 }
 0x101   : > { %v708_v31 = vpop.permute.xlu0 %707 }
 0x102   : > { %v710_v63 = vpop.permute.xlu1 %709  ;;  %v862_v44 = vsel %vm848_vm9, %v845_v60, %v708_v31 }
 0x103   : > { %v864_v6 = vsel %vm848_vm9, %v847_v11, %v710_v63 }
 0x105   : > { %v727_v33 = vpop.permute.xlu0 %726 }
 0x106   : > { %v729_v24 = vpop.permute.xlu1 %728  ;;  %v879_v48 = vsel %vm865_vm10, %v862_v44, %v727_v33 }
 0x107   : > { %v881_v4 = vsel %vm865_vm10, %v864_v6, %v729_v24 }
 0x109   : > { %v746_v35 = vpop.permute.xlu0 %745 }
 0x10a   : > { %v748_v38 = vpop.permute.xlu1 %747  ;;  %v896_v58 = vsel %vm882_vm11, %v879_v48, %v746_v35 }
 0x10b   : > { %v898_v23 = vsel %vm882_vm11, %v881_v4, %v748_v38 }
 0x10d   : > { %v765_v39 = vpop.permute.xlu0 %764 }
 0x10e   : > { %v767_v41 = vpop.permute.xlu1 %766  ;;  %v913_v1 = vsel %vm899_vm12, %v896_v58, %v765_v39 }
 0x10f   : > { %v915_v16 = vsel %vm899_vm12, %v898_v23, %v767_v41 }
 0x111   : > { %v784_v51 = vpop.permute.xlu0 %783 }
 0x112   : > { %v786_v14 = vpop.permute.xlu1 %785  ;;  %v930_v45 = vsel %vm916_vm13, %v913_v1, %v784_v51 }
 0x113   : > { %v932_v57 = vsel %vm916_vm13, %v915_v16, %v786_v14 }
 0x115   : > { %v803_v53 = vpop.permute.xlu0 %802 }
 0x116   : > { %v805_v21 = vpop.permute.xlu1 %804  ;;  %v947_v12 = vsel %vm933_vm14, %v930_v45, %v803_v53 }
 0x117   : > { %v949_v19 = vsel %vm933_vm14, %v932_v57, %v805_v21  ;;  %1419 = vmatprep.mubr.msk.bf16.mxu1 %vm970_vm15, %v947_v12 }
 0x118   : > { %1420 = vmatmul.mubr.msk.bf16.gmra.mxu1 %vm970_vm15, %v949_v19 }
 0x17b   : > { %v1409_v37 = vpop.f32.mrf.mxu0 }
 0x17c   : > { %1150 = vst [vmem:[%s2293_s27 + $0x10] sm:$0xff] %v1409_v37  ;;  %v1112_v36 = vmul.f32 %v1409_v37, %v1409_v37 }
 0x17d   : > { %v1025_v42 = vpop.f32.mrf.mxu0 }
 0x17e   : > { %1148 = vst [vmem:[%s2293_s27] sm:$0xff] %v1025_v42  ;;  %v1110_v50 = vmul.f32 %v1025_v42, %v1025_v42 }
 0x17f   : > { %v1410_v52 = vpop.f32.mrf.mxu0 }
 0x180   : > { %1151 = vst [vmem:[%s2293_s27 + $0x18] sm:$0xff] %v1410_v52  ;;  %v1113_v56 = vmul.f32 %v1410_v52, %v1410_v52 }
 0x181   : > { %v1028_v54 = vpop.f32.mrf.mxu0 }
 0x182   : > { %v1088_v32 = vadd.f32 %v1028_v54, %v1025_v42  ;;  %v1111_v3 = vmul.f32 %v1028_v54, %v1028_v54  ;;  %1149 = vst [vmem:[%s2293_s27 + $0x8] sm:$0xff] %v1028_v54 }
 0x184   : > { %v1089_v49 = vadd.f32 %v1409_v37, %v1088_v32  ;;  %v1126_v55 = vadd.f32 %v1111_v3, %v1110_v50 }
 0x186   : > { %v1127_v15 = vadd.f32 %v1126_v55, %v1112_v36  ;;  %v1090_v59 = vadd.f32 %v1410_v52, %v1089_v49 }
 0x188   : > { %v1128_v27 = vadd.f32 %v1127_v15, %v1113_v56 }
 0x19b   : > { %v1413_v29 = vpop.f32.mrf.mxu0 }
 0x19c   : > { %1154 = vst [vmem:[%s2293_s27 + $0x30] sm:$0xff] %v1413_v29  ;;  %v1116_v5 = vmul.f32 %v1413_v29, %v1413_v29 }
 0x19d   : > { %v1041_v61 = vpop.f32.mrf.mxu0 }
 0x19e   : > { %1152 = vst [vmem:[%s2293_s27 + $0x20] sm:$0xff] %v1041_v61  ;;  %v1114_v22 = vmul.f32 %v1041_v61, %v1041_v61  ;;  %v1091_v34 = vadd.f32 %v1090_v59, %v1041_v61 }
 0x19f   : > { %v1414_v62 = vpop.f32.mrf.mxu0 }
 0x1a0   : > { %1155 = vst [vmem:[%s2293_s27 + $0x38] sm:$0xff] %v1414_v62  ;;  %v1129_v46 = vadd.f32 %v1128_v27, %v1114_v22  ;;  %v1117_v26 = vmul.f32 %v1414_v62, %v1414_v62 }
 0x1a1   : > { %v1044_v9 = vpop.f32.mrf.mxu0 }
 0x1a2   : > { %1153 = vst [vmem:[%s2293_s27 + $0x28] sm:$0xff] %v1044_v9  ;;  %v1115_v43 = vmul.f32 %v1044_v9, %v1044_v9  ;;  %v1092_v2 = vadd.f32 %v1091_v34, %v1044_v9 }
 0x1a4   : > { %v1130_v7 = vadd.f32 %v1129_v46, %v1115_v43  ;;  %v1093_v40 = vadd.f32 %v1413_v29, %v1092_v2 }
 0x1a6   : > { %v1131_v25 = vadd.f32 %v1130_v7, %v1116_v5  ;;  %v1094_v28 = vadd.f32 %v1414_v62, %v1093_v40 }
 0x1a8   : > { %v1132_v30 = vadd.f32 %v1131_v25, %v1117_v26 }
 0x1bb   : > { %v1417_v10 = vpop.f32.mrf.mxu1 }
 0x1bc   : > { %1158 = vst [vmem:[%s2293_s27 + $0x50] sm:$0xff] %v1417_v10  ;;  %v1120_v35 = vmul.f32 %v1417_v10, %v1417_v10 }
 0x1bd   : > { %v1057_v13 = vpop.f32.mrf.mxu1 }
 0x1be   : > { %1156 = vst [vmem:[%s2293_s27 + $0x40] sm:$0xff] %v1057_v13  ;;  %v1118_v18 = vmul.f32 %v1057_v13, %v1057_v13  ;;  %v1095_v0 = vadd.f32 %v1094_v28, %v1057_v13 }
 0x1bf   : > { %v1418_v17 = vpop.f32.mrf.mxu1 }
 0x1c0   : > { %1159 = vst [vmem:[%s2293_s27 + $0x58] sm:$0xff] %v1418_v17  ;;  %v1133_v63 = vadd.f32 %v1132_v30, %v1118_v18  ;;  %v1121_v47 = vmul.f32 %v1418_v17, %v1418_v17 }
 0x1c1   : > { %v1060_v8 = vpop.f32.mrf.mxu1 }
 0x1c2   : > { %1157 = vst [vmem:[%s2293_s27 + $0x48] sm:$0xff] %v1060_v8  ;;  %v1119_v31 = vmul.f32 %v1060_v8, %v1060_v8  ;;  %v1096_v33 = vadd.f32 %v1095_v0, %v1060_v8 }
 0x1c4   : > { %v1134_v24 = vadd.f32 %v1133_v63, %v1119_v31  ;;  %v1097_v38 = vadd.f32 %v1417_v10, %v1096_v33 }
 0x1c6   : > { %v1135_v41 = vadd.f32 %v1134_v24, %v1120_v35  ;;  %v1098_v60 = vadd.f32 %v1418_v17, %v1097_v38 }
 0x1c8   : > { %v1136_v6 = vadd.f32 %v1135_v41, %v1121_v47 }
 0x1d8   : > { %v1421_v39 = vpop.f32.mrf.mxu1 }
 0x1d9   : > { %1162 = vst [vmem:[%s2293_s27 + $0x70] sm:$0xff] %v1421_v39 }
 0x1da   : > { %v1073_v20 = vpop.f32.mrf.mxu1 }
 0x1db   : > { %v1122_v11 = vmul.f32 %v1073_v20, %v1073_v20  ;;  %1160 = vst [vmem:[%s2293_s27 + $0x60] sm:$0xff] %v1073_v20  ;;  %v1099_v51 = vadd.f32 %v1098_v60, %v1073_v20 }
 0x1dc   : > { %v1422_v44 = vpop.f32.mrf.mxu1 }
 0x1dd   : > { %1163 = vst [vmem:[%s2293_s27 + $0x78] sm:$0xff] %v1422_v44  ;;  %v1137_v14 = vadd.f32 %v1136_v6, %v1122_v11 }
 0x1de   : > { %v1076_v48 = vpop.f32.mrf.mxu1 }
 0x1df   : > { %v1100_v4 = vadd.f32 %v1099_v51, %v1076_v48  ;;  %v1123_v58 = vmul.f32 %v1076_v48, %v1076_v48  ;;  %1161 = vst [vmem:[%s2293_s27 + $0x68] sm:$0xff] %v1076_v48 }
 0x1e0   : > { %1544 = shalt.err (!%p1541_p7)
}
 0x1e1   : > { %s1545_s27 = scalar_lea.hbm %s2318_s10, 2048  ;;  %s1549_s8 = scalar_lea.hbm %s2394_s2, 8192 }
 0x1e2   : > { %p1546_p9 = scmp.ne.s32.totalorder %s2318_s10, %s1545_s27  ;;  %p1550_p12 = scmp.lt.s32.totalorder %s2318_s10, %s2394_s2 }
 0x1e3   : > { %p1551_p13 = scmp.lt.s32.totalorder %s1549_s8, %s1545_s27 }
 0x1e4   : > { %p1547_p10 = pnand %p1546_p9, %p1737_p3 }
 0x1e5   : > { %p1552_p0 = por %p1551_p13, %p1550_p12 }
 0x1e6   : > { %p1548_p11 = pneg %p1547_p10 }
 0x1e8   : > { %p1553_p1 = pnand %p1552_p0, %p1548_p11 }
 0x1ea   : > { %1556 = shalt.err (!%p1553_p1)
}
 0x1eb   : > { %s1664_s20 = smov 128   ;;  %v1124_v23 = vmul.f32 %v1421_v39, %v1421_v39  ;;  %v1101_v1 = vadd.f32 %v1421_v39, %v1100_v4  ;;  %v1138_v16 = vadd.f32 %v1137_v14, %v1123_v58  ;;  %v1125_v45 = vmul.f32 %v1422_v44, %v1422_v44  ;;  %s1326_s29 = sshll.u32 %s2290_s21, 1 }
 0x1ec   : > { %1433 = dma.vmem_to_hbm [thread:$0]  (%p1737_p3), %s2312_s6, 2048, %s2318_s10, %s1165_s11, %s1664_s20, %s1664_s20, %s1658_s28  }
 0x1ed   : > { %v1102_v53 = vadd.f32 %v1422_v44, %v1101_v1  ;;  %v1139_v57 = vadd.f32 %v1138_v16, %v1124_v23  ;;  %s1385_s4 = sshll.u32 %s1641_s16, 1  ;;  %s200_s6 = scalar_lea.vmem [#allocation4], %s1326_s29 }
 0x1ee   : > { %s1200_s27 = sadd.s32 %s1637_s15, %s1385_s4  ;;  %s1204_s10 = sshll.u32 %s200_s6, 4  ;;  %s1205_s10 = int_to_ptr.vmem [resolvable:$true] %s1204_s10 }
 0x1ef   : > { %v1103_v21 = vrot.slane %v1102_v53, 4  ;;  %v1140_v12 = vadd.f32 %v1139_v57, %v1125_v45  ;;  %s1386_s28 = sshll.u32 %s1200_s27, 5  ;;  %s1170_s7 = scalar_lea.sflag [#allocation5], %s2290_s21 }
 0x1f0   : > { %s1202_s16 = scalar_lea.hbm %s2395_s3, %s1386_s28  ;;  %s1557_s8 = scalar_lea.vmem %s1205_s10, 32 }
 0x1f1   : > { %v1104_v19 = vadd.f32 %v1103_v21, %v1102_v53  ;;  %v1141_v37 = vrot.slane %v1140_v12, 4  ;;  %p1558_p2 = scmp.ne.s32.totalorder %s1205_s10, %s1557_s8  ;;  %s1665_s15 = smov [#allocation4]  }
 0x1f2   : > { %s1561_s9 = sshll.u32 %s1665_s15, 4  ;;  %s1562_s9 = int_to_ptr.vmem [resolvable:$false] %s1561_s9 }
 0x1f3   : > { %v1105_v42 = vrot.slane %v1104_v19, 2  ;;  %v1142_v52 = vadd.f32 %v1141_v37, %v1140_v12  ;;  %p1559_p4 = pnand %p1558_p2, %p1737_p3  ;;  %s1563_s24 = scalar_lea.vmem %s1562_s9, 64 }
 0x1f4   : > { %p1564_p6 = scmp.lt.s32.totalorder %s1205_s10, %s1562_s9  ;;  %p1565_p7 = scmp.lt.s32.totalorder %s1563_s24, %s1557_s8 }
 0x1f5   : > { %v1106_v54 = vadd.f32 %v1105_v42, %v1104_v19  ;;  %v1143_v50 = vrot.slane %v1142_v52, 2  ;;  %p1560_p5 = pneg %p1559_p4 }
 0x1f6   : > { %p1566_p9 = por %p1565_p7, %p1564_p6 }
 0x1f7   : > { %v1107_v32 = vrot.slane %v1106_v54, 1  ;;  %v1144_v3 = vadd.f32 %v1143_v50, %v1142_v52 }
 0x1f8   : > { %p1567_p10 = pnand %p1566_p9, %p1560_p5 }
 0x1f9   : > { %v1108_v36 = vadd.f32 %v1107_v32, %v1106_v54  ;;  %v1145_v49 = vrot.slane %v1144_v3, 1 }
 0x1fb   : > { %1109 = vst [vmem:[%s200_s6] sm:$0x1] %v1108_v36  ;;  %v1146_v55 = vadd.f32 %v1145_v49, %v1144_v3 }
 0x1fd   : > { %1147 = vst [vmem:[%s200_s6 + $0x1] sm:$0x1] %v1146_v55 }
 0x1fe   : > { %1570 = shalt.err (!%p1567_p10)
}
 0x1ff   : > { %s1571_s20 = scalar_lea.hbm %s1202_s16, 32  ;;  %s1575_s4 = scalar_lea.hbm %s2395_s3, 128 }
 0x200   : > { %p1572_p11 = scmp.ne.s32.totalorder %s1202_s16, %s1571_s20  ;;  %p1576_p0 = scmp.lt.s32.totalorder %s1202_s16, %s2395_s3 }
 0x201   : > { %p1577_p1 = scmp.lt.s32.totalorder %s1575_s4, %s1571_s20 }
 0x202   : > { %p1573_p12 = pnand %p1572_p11, %p1737_p3 }
 0x203   : > { %p1578_p2 = por %p1577_p1, %p1576_p0 }
 0x204   : > { %p1574_p13 = pneg %p1573_p12 }
 0x206   : > { %p1579_p4 = pnand %p1578_p2, %p1574_p13 }
 0x208   : > { %1582 = shalt.err (!%p1579_p4)
}
 0x209   : > { %1434 = dma.vmem_to_hbm [thread:$0]  (%p1737_p3), %s1205_s10, 32, %s1202_s16, %s1170_s7  }
 0x20a PF: > { %p1444_p5 = scmp.ge.s32.totalorder %s1653_s19, 2  ;;  %s1216_s6 = sand.u32 1, %s1625_s12  }
 0x20b   : > { %s1217_s11 = scalar_lea.sflag [#allocation3], %s1216_s6 }
 0x20c   : > { %p1438_p6 = pnand %p1444_p5, %p1746_p8 }
 0x20e   : > { %p1439_p7 = pneg %p1438_p6 }
 0x210   : > { %1616 = dma.done.wait (%p1439_p7), %s1217_s11, 2048  }
 0x211   : > { %1618 = vsyncadd (%p1439_p7), %s1217_s11, 4294965248  ;;  %s1226_s5 = scalar_lea.sflag [#allocation5], %s1216_s6 }
 0x212   : > { %1620 = dma.done.wait (%p1439_p7), %s1226_s5, 32  }
 0x213   : > { %1622 = vsyncadd (%p1439_p7), %s1226_s5, 4294967264  ;;  %s20_s19 = sadd.s32 1, %s1653_s19   ;;  %s2402_s12 = smov %s1629_s13 }
 0x214   : > { %p17_p9 = scmp.ge.s32.totalorder %s20_s19, 6   ;;  %s2403_s13 = smov %s1633_s14 }
 0x215   : > { %s2404_s14 = smov %s1755_s30  ;;  %s2405_s15 = smov %s1645_s17 }
 0x216   : > { %s2406_s16 = smov %s1649_s18  ;;  %s2407_s17 = smov %s2410_s22 }
 0x217   : > { %s2408_s18 = smov %s2414_s23  ;;  %19 = sbr.rel (!%p17_p9) target bundleno = 7 (0x7), region = 80 }
 0x21c   :  { %1231 = vsyncpa [#allocation3], 1 }
 0x21d   :  { %1233 = vsyncpa [#allocation3 + $0x1], 1 }
 0x21e   :  { %1234 = vsyncpa [#allocation5], 1 }
 0x21f   :  { %1236 = vsyncpa [#allocation5 + $0x1], 1 }

</bundles_post_ra>
